<compile_context>
chip_gen: v5e
topology: v5e:2x2
jax: 0.10.0
libtpu: 0.0.40
codegen_flags: <defaults>
</compile_context>

<pallas_src>
import functools

import jax
import jax.numpy as jnp
from jax.experimental import pallas as pl
from jax.experimental.pallas import tpu as pltpu

_LANE = 128


def _cdiv(a, b):
    return -(-a // b)


def _ckan_fused_kernel(x_ref, *refs, n_layers, degree, inner, n_chunks):
    """Fused feature-major cKAN stack.

    x_ref   : (in_dim0, tm) f32              -- batch on the lane axis
    refs    : (w_0..w_{L-1}, b_0..b_{L-1}, o_ref)
      w_l   : (out_l, degree*in_l) f32       -- w_l[o, (d-1)*in + i] = coeffs[i, o, d]
      b_l   : (out_l, 1) f32                 -- sum_i coeffs[i, o, 0]   (T0 term)
    o_ref   : (out_dim_last, tm)
    """
    w_refs = refs[:n_layers]
    b_refs = refs[n_layers:2 * n_layers]
    o_ref = refs[2 * n_layers]

    # Static inner chunk loop: keeps the f32 working set (t, t_p, t_pp, basis,
    # acc) small regardless of the (large) HBM tile width `tm`.
    for c in range(n_chunks):
        c0 = c * inner
        x = x_ref[:, pl.ds(c0, inner)].astype(jnp.float32)      # (in0, inner)
        for l in range(n_layers):
            w = w_refs[l][...]                                   # (out, deg*in) f32
            bias = b_refs[l][...]                                # (out, 1) f32
            t = jnp.tanh(x)                                      # EUP, lane-dense
            if degree >= 1:
                # Chebyshev recurrence in f32 on the VPU, stacked along the
                # sublane (feature) axis -> single packed MXU matmul.
                terms = [t]
                t_pp, t_p = jnp.ones_like(t), t
                for _ in range(2, degree + 1):
                    t_c = 2.0 * t * t_p - t_pp
                    terms.append(t_c)
                    t_pp, t_p = t_p, t_c
                basis = terms[0] if len(terms) == 1 else jnp.concatenate(terms, axis=0)
                x = bias + jnp.dot(w, basis, preferred_element_type=jnp.float32)
            else:
                x = jnp.broadcast_to(bias, (bias.shape[0], inner))
        o_ref[:, pl.ds(c0, inner)] = x.astype(o_ref.dtype)


def ckan_forward(xT, w_pack, biases, degree, *, tm_max=2048):
    """Fused forward over the whole stack, feature-major.

    xT      : (in_dim0, B) float32  (batch on the last axis)
    w_pack  : list of (out_l, degree*in_l) float32
    biases  : list of (out_l, 1) float32
    returns : (out_dim_last, B) float32
    """
    in0, B = xT.shape
    n_layers = len(w_pack)
    out_dim = biases[-1].shape[0]

    if B <= _LANE:
        # One full-array block (full-extent dims are always legal); padding a
        # tiny batch up to 128 lanes would just waste compute.
        tm, pad = B, 0
    else:
        # Lane-dense tiles (multiple of 128). Aim for >= 2 grid steps so v7x
        # megacore can shard the parallel axis across both TensorCores.
        tm = min(tm_max, _LANE * _cdiv(_cdiv(B, 2), _LANE))
        pad = (-B) % tm
    xp = jnp.pad(xT, ((0, 0), (0, pad))) if pad else xT
    Bp = B + pad

    # Inner chunk width: 256 (or 128) lanes per compute chunk inside the tile.
    if tm % 256 == 0:
        inner = 256
    elif tm % _LANE == 0:
        inner = _LANE
    else:
        inner = tm
    n_chunks = tm // inner

    in_specs = [pl.BlockSpec((in0, tm), lambda i: (0, i))]
    for w in w_pack:
        in_specs.append(pl.BlockSpec(w.shape, lambda i: (0, 0)))
    for b in biases:
        in_specs.append(pl.BlockSpec(b.shape, lambda i: (0, 0)))
    out_specs = pl.BlockSpec((out_dim, tm), lambda i: (0, i))

    out = pl.pallas_call(
        functools.partial(_ckan_fused_kernel, n_layers=n_layers, degree=degree,
                          inner=inner, n_chunks=n_chunks),
        out_shape=jax.ShapeDtypeStruct((out_dim, Bp), xT.dtype),
        grid_spec=pltpu.PrefetchScalarGridSpec(
            num_scalar_prefetch=0,
            grid=(Bp // tm,),
            in_specs=in_specs,
            out_specs=out_specs,
        ),
        compiler_params=pltpu.CompilerParams(
            dimension_semantics=("parallel",)),
    )(xp, *w_pack, *biases)
    return out[:, :B] if pad else out


class CKANArchCorePallas:
    """Pallas port of cKANArchCore (add_layernorm=False, the default)."""

    def __init__(self, layers_hidden=(2, 2), degree=4, key=None):
        if key is None:
            key = jax.random.PRNGKey(0)
        self.degree = degree
        self.layers_hidden = tuple(layers_hidden)
        self.coeffs = []                       # f32 (in, out, degree+1), as in PyTorch
        for fin, fout in zip(layers_hidden, layers_hidden[1:]):
            key, sub = jax.random.split(key)
            std = 1.0 / (fin * (degree + 1))   # matches nn.init.normal_ std
            self.coeffs.append(
                std * jax.random.normal(sub, (fin, fout, degree + 1), jnp.float32))

        # Packed per-layer weights (one MXU matmul per layer, feature-major):
        #   w_pack[o, (d-1)*in + i] = coeffs[i, o, d],  d = 1..degree
        # and an f32 bias for the constant T0 term: bias[o] = sum_i coeffs[i, o, 0].
        self._w_pack, self._bias = [], []
        for c in self.coeffs:
            fin, fout, _ = c.shape
            if degree >= 1:
                wp = jnp.transpose(c[:, :, 1:], (2, 0, 1)).reshape(degree * fin, fout).T
            else:
                wp = jnp.zeros((fout, fin), jnp.float32)   # unused when degree == 0
            self._w_pack.append(jnp.asarray(wp, jnp.float32))
            self._bias.append(c[:, :, 0].sum(axis=0)[:, None].astype(jnp.float32))

    def __call__(self, x):
        if x.ndim == 1:
            # "modulus" path: single row — plain JAX, a kernel launch would be
            # pure overhead at these sizes.
            return self.reference(x)
        # Per-layer reshape(-1, in_dim) collapses to a single leading reshape
        # because consecutive layer dims match by construction. Transpose to
        # feature-major so the batch rides the 128-lane axis inside the kernel.
        x2 = x.reshape(-1, self.layers_hidden[0])
        yT = ckan_forward(x2.T, self._w_pack, self._bias, self.degree)
        return yT.T

    # pure-JAX f32 reference (mirrors the PyTorch forward) for correctness check
    def reference(self, x):
        is_modulus = (x.ndim == 1)
        if is_modulus:
            x = x[None, :]
        for c in self.coeffs:
            in_dim = c.shape[0]
            x = x.reshape(-1, in_dim)
            t = jnp.tanh(x)
            terms = [jnp.ones_like(t), t]
            for _ in range(2, self.degree + 1):
                terms.append(2.0 * t * terms[-1] - terms[-2])
            cheby = jnp.stack(terms[: self.degree + 1], axis=-1)   # (b, i, d)
            x = jnp.einsum('bid,iod->bo', cheby, c)
        if is_modulus:
            x = jnp.squeeze(x, 0)
        return x


if __name__ == "__main__":
    key = jax.random.PRNGKey(0)
    k_param, k_x = jax.random.split(key)

    layers_hidden = [8, 32, 16]
    degree = 4
    batch = 16

    model = CKANArchCorePallas(layers_hidden=layers_hidden, degree=degree, key=k_param)
    x = jax.random.normal(k_x, (batch, layers_hidden[0]), jnp.float32)

    y = jax.block_until_ready(model(x))
    y_ref = jax.block_until_ready(model.reference(x))
    assert y.shape == (batch, layers_hidden[-1])
    # f32 operands; loose-ish tolerance only to absorb MXU default-precision rounding.
    assert jnp.allclose(y, y_ref, rtol=2e-2, atol=2e-3), float(jnp.max(jnp.abs(y - y_ref)))

    # Exercise the lane-dense multi-grid-step / multi-chunk path (B > 128).
    xb = jax.random.normal(jax.random.PRNGKey(1), (700, layers_hidden[0]), jnp.float32)
    yb = jax.block_until_ready(model(xb))
    yb_ref = jax.block_until_ready(model.reference(xb))
    assert yb.shape == (700, layers_hidden[-1])
    assert jnp.allclose(yb, yb_ref, rtol=2e-2, atol=2e-3), float(jnp.max(jnp.abs(yb - yb_ref)))

    # 1-D "modulus" path (plain-JAX branch) — shape check only.
    y1 = jax.block_until_ready(model(x[0]))
    assert y1.shape == (layers_hidden[-1],)

    print("KERNEL_OK")
</pallas_src>

<mosaic_0001>
module attributes {stable_mosaic.version = 11 : i64} {
  func.func @_ckan_fused_kernel(%arg0: i32, %arg1: memref<8x16xf32, #tpu.memory_space<vmem>>, %arg2: memref<32x32xf32, #tpu.memory_space<vmem>>, %arg3: memref<16x128xf32, #tpu.memory_space<vmem>>, %arg4: memref<32x1xf32, #tpu.memory_space<vmem>>, %arg5: memref<16x1xf32, #tpu.memory_space<vmem>>, %arg6: memref<16x16xf32, #tpu.memory_space<vmem>>) attributes {dimension_semantics = [#tpu.dimension_semantics<parallel>], iteration_bounds = array<i64: 1>, scalar_prefetch = 0 : i64, scratch_operands = 0 : i64, tpu.core_type = #tpu.core_type<tc>, window_params = [{transform_indices = @transform_0, window_bounds = array<i64: 8, 16>}, {pipeline_mode = #tpu.pipeline_mode<synchronous>, transform_indices = @transform_1, window_bounds = array<i64: 32, 32>}, {pipeline_mode = #tpu.pipeline_mode<synchronous>, transform_indices = @transform_2, window_bounds = array<i64: 16, 128>}, {pipeline_mode = #tpu.pipeline_mode<synchronous>, transform_indices = @transform_3, window_bounds = array<i64: 32, 1>}, {pipeline_mode = #tpu.pipeline_mode<synchronous>, transform_indices = @transform_4, window_bounds = array<i64: 16, 1>}, {transform_indices = @transform_5, window_bounds = array<i64: 16, 16>}]} {
    %c0 = arith.constant 0 : index
    %c0_0 = arith.constant 0 : index
    %0 = vector.load %arg1[%c0, %c0_0] : memref<8x16xf32, #tpu.memory_space<vmem>>, vector<8x16xf32>
    %c0_1 = arith.constant 0 : index
    %c0_2 = arith.constant 0 : index
    %1 = vector.load %arg2[%c0_1, %c0_2] : memref<32x32xf32, #tpu.memory_space<vmem>>, vector<32x32xf32>
    %c0_3 = arith.constant 0 : index
    %c0_4 = arith.constant 0 : index
    %2 = vector.load %arg4[%c0_3, %c0_4] : memref<32x1xf32, #tpu.memory_space<vmem>>, vector<32x1xf32>
    %3 = math.tanh %0 : vector<8x16xf32>
    %cst = arith.constant 1.000000e+00 : f32
    %4 = vector.broadcast %cst : f32 to vector<8x16xf32>
    %cst_5 = arith.constant 2.000000e+00 : f32
    %5 = vector.broadcast %cst_5 : f32 to vector<8x16xf32>
    %6 = arith.mulf %5, %3 : vector<8x16xf32>
    %7 = arith.mulf %6, %3 : vector<8x16xf32>
    %8 = arith.subf %7, %4 : vector<8x16xf32>
    %cst_6 = arith.constant 2.000000e+00 : f32
    %9 = vector.broadcast %cst_6 : f32 to vector<8x16xf32>
    %10 = arith.mulf %9, %3 : vector<8x16xf32>
    %11 = arith.mulf %10, %8 : vector<8x16xf32>
    %12 = arith.subf %11, %3 : vector<8x16xf32>
    %cst_7 = arith.constant 2.000000e+00 : f32
    %13 = vector.broadcast %cst_7 : f32 to vector<8x16xf32>
    %14 = arith.mulf %13, %3 : vector<8x16xf32>
    %15 = arith.mulf %14, %12 : vector<8x16xf32>
    %16 = arith.subf %15, %8 : vector<8x16xf32>
    %17 = tpu.concatenate %3, %8, %12, %16 in 0 : vector<8x16xf32>, vector<8x16xf32>, vector<8x16xf32>, vector<8x16xf32> -> vector<32x16xf32>
    %cst_8 = arith.constant dense<0.000000e+00> : vector<32x16xf32>
    %18 = tpu.matmul %1, %17, %cst_8 {dimension_numbers = #tpu.dot_dimension_numbers<[1], [0], [0], [1], [0, 0, 1, 1], [], []>} : vector<32x32xf32>, vector<32x16xf32>, vector<32x16xf32> -> vector<32x16xf32>
    %19 = vector.broadcast %2 : vector<32x1xf32> to vector<32x16xf32>
    %20 = arith.addf %19, %18 : vector<32x16xf32>
    %c0_9 = arith.constant 0 : index
    %c0_10 = arith.constant 0 : index
    %21 = vector.load %arg3[%c0_9, %c0_10] : memref<16x128xf32, #tpu.memory_space<vmem>>, vector<16x128xf32>
    %c0_11 = arith.constant 0 : index
    %c0_12 = arith.constant 0 : index
    %22 = vector.load %arg5[%c0_11, %c0_12] : memref<16x1xf32, #tpu.memory_space<vmem>>, vector<16x1xf32>
    %23 = math.tanh %20 : vector<32x16xf32>
    %cst_13 = arith.constant 1.000000e+00 : f32
    %24 = vector.broadcast %cst_13 : f32 to vector<32x16xf32>
    %cst_14 = arith.constant 2.000000e+00 : f32
    %25 = vector.broadcast %cst_14 : f32 to vector<32x16xf32>
    %26 = arith.mulf %25, %23 : vector<32x16xf32>
    %27 = arith.mulf %26, %23 : vector<32x16xf32>
    %28 = arith.subf %27, %24 : vector<32x16xf32>
    %cst_15 = arith.constant 2.000000e+00 : f32
    %29 = vector.broadcast %cst_15 : f32 to vector<32x16xf32>
    %30 = arith.mulf %29, %23 : vector<32x16xf32>
    %31 = arith.mulf %30, %28 : vector<32x16xf32>
    %32 = arith.subf %31, %23 : vector<32x16xf32>
    %cst_16 = arith.constant 2.000000e+00 : f32
    %33 = vector.broadcast %cst_16 : f32 to vector<32x16xf32>
    %34 = arith.mulf %33, %23 : vector<32x16xf32>
    %35 = arith.mulf %34, %32 : vector<32x16xf32>
    %36 = arith.subf %35, %28 : vector<32x16xf32>
    %37 = tpu.concatenate %23, %28, %32, %36 in 0 : vector<32x16xf32>, vector<32x16xf32>, vector<32x16xf32>, vector<32x16xf32> -> vector<128x16xf32>
    %cst_17 = arith.constant dense<0.000000e+00> : vector<16x16xf32>
    %38 = tpu.matmul %21, %37, %cst_17 {dimension_numbers = #tpu.dot_dimension_numbers<[1], [0], [0], [1], [0, 0, 1, 1], [], []>} : vector<16x128xf32>, vector<128x16xf32>, vector<16x16xf32> -> vector<16x16xf32>
    %39 = vector.broadcast %22 : vector<16x1xf32> to vector<16x16xf32>
    %40 = arith.addf %39, %38 : vector<16x16xf32>
    %c0_18 = arith.constant 0 : index
    %c0_19 = arith.constant 0 : index
    %41 = vector.load %arg6[%c0_18, %c0_19] : memref<16x16xf32, #tpu.memory_space<vmem>>, vector<16x16xf32>
    tpu.vector_store %arg6[%c0_18, %c0_19], %40 {strides = array<i32>} : memref<16x16xf32, #tpu.memory_space<vmem>>, vector<16x16xf32>,
    return
  }
  func.func @transform_0(%arg0: i32) -> (i32, i32) {
    %c0_i32 = arith.constant 0 : i32
    %c0_i32_0 = arith.constant 0 : i32
    return %c0_i32, %arg0 : i32, i32
  }
  func.func @transform_1(%arg0: i32) -> (i32, i32) {
    %c0_i32 = arith.constant 0 : i32
    %c0_i32_0 = arith.constant 0 : i32
    %c0_i32_1 = arith.constant 0 : i32
    return %c0_i32, %c0_i32_0 : i32, i32
  }
  func.func @transform_2(%arg0: i32) -> (i32, i32) {
    %c0_i32 = arith.constant 0 : i32
    %c0_i32_0 = arith.constant 0 : i32
    %c0_i32_1 = arith.constant 0 : i32
    return %c0_i32, %c0_i32_0 : i32, i32
  }
  func.func @transform_3(%arg0: i32) -> (i32, i32) {
    %c0_i32 = arith.constant 0 : i32
    %c0_i32_0 = arith.constant 0 : i32
    %c0_i32_1 = arith.constant 0 : i32
    return %c0_i32, %c0_i32_0 : i32, i32
  }
  func.func @transform_4(%arg0: i32) -> (i32, i32) {
    %c0_i32 = arith.constant 0 : i32
    %c0_i32_0 = arith.constant 0 : i32
    %c0_i32_1 = arith.constant 0 : i32
    return %c0_i32, %c0_i32_0 : i32, i32
  }
  func.func @transform_5(%arg0: i32) -> (i32, i32) {
    %c0_i32 = arith.constant 0 : i32
    %c0_i32_0 = arith.constant 0 : i32
    return %c0_i32, %arg0 : i32, i32
  }
}

</mosaic_0001>

<bundles_post_ra>
// kernel: tpu_custom_call.1
= control target key start
LH: loop header
LB: loop body
LE: loop exit
PB: predicated region body
PF: predicated region fallthrough
CT: control target
= control target key end

     0   :  { %10 = vsyncpa [#allocation3], 0  ;;  %s401_s0 = inlined_call_operand.hbm [shape: f32[8,16], index: 0, kind: input, shape index: {}]   ;;  %s402_s1 = inlined_call_operand.vmem [shape: f32[32,32], index: 1, kind: input, shape index: {}]   ;;  %s403_s2 = inlined_call_operand.vmem [shape: f32[16,128], index: 2, kind: input, shape index: {}]   ;;  %s404_s3 = inlined_call_operand.vmem [shape: f32[32,1], index: 3, kind: input, shape index: {}]   ;;  %s405_s4 = inlined_call_operand.vmem [shape: f32[16,1], index: 4, kind: input, shape index: {}]   ;;  %s406_s5 = inlined_call_operand.hbm [shape: f32[16,16], index: 5, kind: output, shape index: {}]  }
   0x1   :  { %11 = vsyncpa [#allocation4], 0  ;;  %s17_s20 = sshll.u32 %s401_s0, 4  ;;  %s310_s21 = smov [#allocation2]   ;;  %s18_s20 = int_to_ptr.hbm [resolvable:$true] %s17_s20 }
   0x2   :  { %s19_s22 = sshll.u32 %s310_s21, 4  ;;  %s20_s22 = int_to_ptr.vmem [resolvable:$true] %s19_s22 }
   0x3   :  { %22 = dma.hbm_to_vmem [thread:$0]  %s18_s20, 128, %s20_s22, [#allocation3]  }
   0x4   :  { %306 = dma.done.wait [#allocation3], 128  }
   0x5   :  { %307 = vsyncadd [#allocation3], 4294967168  ;;  %v35_v0 = vld [vmem:[#allocation2] sm:$0xff]  ;;  %v41_v1 = vld [vmem:[%s404_s3 + $0x8] sm:$0xff]  ;;  %v311_v2 = vmov 0   ;;  %vm52_vm0 = vcmask 261120  }
   0x6   :  { %248 = vtanh.f32 %v35_v0  ;;  %246 = vset.pattern.permute.xlu1 %v311_v2  ;;  %245 = vset.pattern.permute.xlu0 %v311_v2  ;;  %v43_v7 = vld [vmem:[%s404_s3 + $0x18] sm:$0xff]  ;;  %v40_v8 = vld [vmem:[%s404_s3] sm:$0xff]  ;;  %v42_v13 = vld [vmem:[%s404_s3 + $0x10] sm:$0xff]  ;;  %vm189_vm1 = vcmask 130048   ;;  %s312_s18 = smov [#allocation5]   ;;  %s198_s22 = sshll.u32 %s406_s5, 4  ;;  %s199_s22 = int_to_ptr.hbm [resolvable:$true] %s198_s22 }
   0x7   :  { %101 = vperm.xlu1 %246, %v41_v1   ;;  %247 = vset.pattern.permute.xlu2 %v311_v2  ;;  %v37_v14 = vld [vmem:[%s402_s1 + $0x8] sm:$0xff]  ;;  %v36_v15 = vld [vmem:[%s402_s1] sm:$0xff]  ;;  %v38_v16 = vld [vmem:[%s402_s1 + $0x10] sm:$0xff]  ;;  %s196_s19 = sshll.u32 %s312_s18, 4  ;;  %s314_s23 = smov 8   ;;  %s197_s19 = int_to_ptr.vmem [resolvable:$true] %s196_s19 }
   0x8   :  { %111 = vperm.xlu0 %245, %v43_v7   ;;  %v39_v17 = vld [vmem:[%s402_s1 + $0x18] sm:$0xff]  ;;  %v120_v58 = vld [vmem:[%s405_s4] sm:$0xff]  ;;  %v121_v63 = vld [vmem:[%s405_s4 + $0x8] sm:$0xff] }
   0x9   :  { %179 = vperm.xlu2 %247, %v120_v58   ;;  %v118_v0 = vld [vmem:[%s403_s2] sm:$0xff]  ;;  %v119_v1 = vld [vmem:[%s403_s2 + $0x8] sm:$0xff]  ;;  %s313_s2 = smov 128  }
   0xc   :  { %v249_v3 = vpop.eup %248 }
   0xd   :  { %v45_v4 = vmul.f32 2.0, %v249_v3 }
   0xf   :  { %v46_v5 = vmul.f32 %v249_v3, %v45_v4  ;;  %96 = vperm.xlu1 %246, %v40_v8  }
  0x10   :  { %106 = vperm.xlu0 %245, %v42_v13  }
  0x11   :  { %v211_v6 = vadd.f32 -1.0, %v46_v5  ;;  %184 = vperm.xlu2 %247, %v121_v63  }
  0x13   :  { %v48_v9 = vmul.f32 %v211_v6, %v45_v4 }
  0x15   :  { %v49_v10 = vsub.f32 %v48_v9, %v249_v3 }
  0x17   :  { %v50_v11 = vmul.f32 %v49_v10, %v45_v4 }
  0x19   :  { %v51_v12 = vsub.f32 %v50_v11, %v211_v6 }
  0x1b   :  { %220 = vmatpush.msra.mxu3 %v51_v12  ;;  %77 = vmatpush.msra.mxu0 %v51_v12 }
  0x1d   :  { %221 = vmatpush.msra.mxu3 %v49_v10  ;;  %78 = vmatpush.msra.mxu0 %v49_v10 }
  0x1f   :  { %222 = vmatpush.msra.mxu3 %v211_v6  ;;  %79 = vmatpush.msra.mxu0 %v211_v6 }
  0x21   :  { %223 = vmatpush.msra.mxu3 %v249_v3  ;;  %80 = vmatpush.msra.mxu0 %v249_v3 }
  0x22   :  { %213 = vmatmul.msk.f32.vlgmr.msra.gmra.mxu3 %vm52_vm0, %v37_v14  ;;  %212 = vmatmul.msk.f32.vlgmr.msra.gmra.mxu0 %vm52_vm0, %v36_v15 }
  0x2a   :  { %214 = vmatmul.msk.f32.gmra.mxu3 %vm52_vm0, %v38_v16 }
  0x32   :  { %215 = vmatmul.msk.f32.gmra.mxu3 %vm52_vm0, %v39_v17 }
  0x63   :  { %v180_v2 = vpop.permute.xlu2 %179 }
  0x6b   :  { %v185_v5 = vpop.permute.xlu2 %184 }
  0x79   :  { %v102_v18 = vpop.permute.xlu1 %101 }
  0x7a   :  { %v112_v19 = vpop.permute.xlu0 %111 }
  0x81   :  { %v97_v21 = vpop.permute.xlu1 %96 }
  0x82   :  { %v107_v25 = vpop.permute.xlu0 %106 }
  0x9f   :  { %v82_v22 = vpop.f32.mrf.mxu0 }
  0xa0   :  { %v114_v24 = vadd.f32 %v97_v21, %v82_v22 }
  0xa5   :  { %v85_v20 = vpop.f32.mrf.mxu3 }
  0xa6   :  { %v115_v23 = vadd.f32 %v102_v18, %v85_v20 }
  0xa8   :  { %250 = vtanh.f32 %v115_v23 }
  0xa9   :  { %252 = vtanh.f32 %v114_v24 }
  0xad   :  { %v88_v26 = vpop.f32.mrf.mxu3 }
  0xae   :  { %v116_v27 = vadd.f32 %v107_v25, %v88_v26  ;;  %v372_v28 = vpop.eup %250 }
  0xaf   :  { %v374_v29 = vpop.eup %252  ;;  %v127_v34 = vmul.f32 2.0, %v372_v28 }
  0xb0   :  { %254 = vtanh.f32 %v116_v27  ;;  %v126_v36 = vmul.f32 2.0, %v374_v29 }
  0xb1   :  { %v131_v37 = vmul.f32 %v372_v28, %v127_v34 }
  0xb2   :  { %v130_v39 = vmul.f32 %v374_v29, %v126_v36 }
  0xb3   :  { %v217_v42 = vadd.f32 -1.0, %v131_v37 }
  0xb4   :  { %v216_v45 = vadd.f32 -1.0, %v130_v39 }
  0xb5   :  { %v91_v30 = vpop.f32.mrf.mxu3  ;;  %v139_v47 = vmul.f32 %v217_v42, %v127_v34 }
  0xb6   :  { %v255_v31 = vpop.eup %254  ;;  %v117_v32 = vadd.f32 %v112_v19, %v91_v30  ;;  %v138_v50 = vmul.f32 %v216_v45, %v126_v36 }
  0xb7   :  { %v128_v33 = vmul.f32 2.0, %v255_v31  ;;  %v143_v52 = vsub.f32 %v139_v47, %v372_v28 }
  0xb8   :  { %256 = vtanh.f32 %v117_v32  ;;  %v142_v55 = vsub.f32 %v138_v50, %v374_v29 }
  0xb9   :  { %v132_v35 = vmul.f32 %v255_v31, %v128_v33  ;;  %v147_v57 = vmul.f32 %v143_v52, %v127_v34 }
  0xba   :  { %v146_v60 = vmul.f32 %v142_v55, %v126_v36 }
  0xbb   :  { %v218_v38 = vadd.f32 -1.0, %v132_v35  ;;  %v151_v61 = vsub.f32 %v147_v57, %v217_v42 }
  0xbc   :  { %v150_v62 = vsub.f32 %v146_v60, %v216_v45 }
  0xbd   :  { %v140_v44 = vmul.f32 %v218_v38, %v128_v33 }
  0xbe   :  { %v257_v40 = vpop.eup %256 }
  0xbf   :  { %v129_v41 = vmul.f32 2.0, %v257_v40  ;;  %v144_v49 = vsub.f32 %v140_v44, %v255_v31 }
  0xc1   :  { %v133_v43 = vmul.f32 %v257_v40, %v129_v41  ;;  %v148_v54 = vmul.f32 %v144_v49, %v128_v33 }
  0xc3   :  { %v219_v46 = vadd.f32 -1.0, %v133_v43  ;;  %v152_v59 = vsub.f32 %v148_v54, %v218_v38 }
  0xc5   :  { %v141_v48 = vmul.f32 %v219_v46, %v129_v41 }
  0xc7   :  { %v145_v51 = vsub.f32 %v141_v48, %v257_v40 }
  0xc9   :  { %v149_v53 = vmul.f32 %v145_v51, %v129_v41 }
  0xcb   :  { %v153_v56 = vsub.f32 %v149_v53, %v219_v46 }
  0xcd   :  { %154 = vmatpush.msra.mxu1 %v153_v56  ;;  %224 = vmatpush.msra.mxu2 %v153_v56 }
  0xcf   :  { %155 = vmatpush.msra.mxu1 %v152_v59  ;;  %225 = vmatpush.msra.mxu2 %v152_v59 }
  0xd1   :  { %156 = vmatpush.msra.mxu1 %v151_v61  ;;  %226 = vmatpush.msra.mxu2 %v151_v61 }
  0xd3   :  { %157 = vmatpush.msra.mxu1 %v150_v62  ;;  %227 = vmatpush.msra.mxu2 %v150_v62 }
  0xd5   :  { %158 = vmatpush.msra.mxu1 %v145_v51  ;;  %228 = vmatpush.msra.mxu2 %v145_v51 }
  0xd7   :  { %159 = vmatpush.msra.mxu1 %v144_v49  ;;  %229 = vmatpush.msra.mxu2 %v144_v49 }
  0xd9   :  { %160 = vmatpush.msra.mxu1 %v143_v52  ;;  %230 = vmatpush.msra.mxu2 %v143_v52 }
  0xdb   :  { %161 = vmatpush.msra.mxu1 %v142_v55  ;;  %231 = vmatpush.msra.mxu2 %v142_v55 }
  0xdd   :  { %162 = vmatpush.msra.mxu1 %v219_v46  ;;  %232 = vmatpush.msra.mxu2 %v219_v46 }
  0xdf   :  { %163 = vmatpush.msra.mxu1 %v218_v38  ;;  %233 = vmatpush.msra.mxu2 %v218_v38 }
  0xe1   :  { %164 = vmatpush.msra.mxu1 %v217_v42  ;;  %234 = vmatpush.msra.mxu2 %v217_v42 }
  0xe3   :  { %165 = vmatpush.msra.mxu1 %v216_v45  ;;  %235 = vmatpush.msra.mxu2 %v216_v45 }
  0xe5   :  { %166 = vmatpush.msra.mxu1 %v257_v40  ;;  %236 = vmatpush.msra.mxu2 %v257_v40 }
  0xe7   :  { %167 = vmatpush.msra.mxu1 %v255_v31  ;;  %237 = vmatpush.msra.mxu2 %v255_v31 }
  0xe9   :  { %168 = vmatpush.msra.mxu1 %v372_v28  ;;  %238 = vmatpush.msra.mxu2 %v372_v28 }
  0xeb   :  { %169 = vmatpush.msra.mxu1 %v374_v29  ;;  %239 = vmatpush.msra.mxu2 %v374_v29 }
  0xec   :  { %170 = vmatmul.f32.vlgmr.msra.gmra.mxu1 %v118_v0  ;;  %173 = vmatmul.f32.vlgmr.msra.gmra.mxu2 %v119_v1 }
 0x169   :  { %v171_v3 = vpop.f32.mrf.mxu1 }
 0x16a   :  { %v187_v4 = vadd.f32 %v180_v2, %v171_v3 }
 0x16c   :  { %190 = vst.msk [vmem:[#allocation5] sm:$0xff] %vm189_vm1, %v187_v4 }
 0x16f   :  { %v174_v6 = vpop.f32.mrf.mxu2 }
 0x170   :  { %v188_v7 = vadd.f32 %v185_v5, %v174_v6 }
 0x172   :  { %191 = vst.msk [vmem:[#allocation5 + $0x8] sm:$0xff] %vm189_vm1, %v188_v7 }
 0x173   :  { %204 = dma.vmem_to_hbm [thread:$0]  %s197_s19, 256, %s199_s22, [#allocation4], %s313_s2, %s313_s2, %s314_s23  }
 0x174   :  { %308 = dma.done.wait [#allocation4], 256  }
 0x175   :  { %309 = vsyncadd [#allocation4], 4294967040 }
 0x176   :  { %209 = vsyncpa [#allocation3], 1 }
 0x177   :  { %210 = vsyncpa [#allocation4], 1 }

</bundles_post_ra>
